<compile_context>
chip_gen: v7x
topology: tpu7x:2x2x1
jax: 0.10.0
libtpu: 0.0.40
codegen_flags: <defaults>
</compile_context>

<pallas_src>
import functools

import jax
import jax.numpy as jnp
from jax.experimental import pallas as pl
from jax.experimental.pallas import tpu as pltpu


def _round_up(x, m):
    return ((x + m - 1) // m) * m


def _sublane_align(dtype):
    # f32 -> 8 sublanes per vreg, bf16 -> 16, int8/fp8 -> 32 (packed along sublanes).
    return {4: 8, 2: 16, 1: 32}.get(jnp.dtype(dtype).itemsize, 8)


def _pick_tile(dim, cap, align):
    """Largest aligned tile <= cap that keeps padding overhead <= ~12.5%."""
    aligned = _round_up(dim, align)
    if aligned <= cap:
        return aligned
    t = cap
    while t > align and (_round_up(dim, t) - dim) * 8 > dim:
        t //= 2
    return max(_round_up(t, align), align)


def _vmem_limit(working_set_bytes):
    # <=48 MiB leaves headroom inside v7x's 64 MiB physical VMEM; >=32 MiB raises the
    # v5e (16 MiB) / v6e (32 MiB) scoped defaults so large tiles still compile.
    return int(min(48 << 20, max(32 << 20, 2 * working_set_bytes)))


# ---------------- kernels ----------------

def _mm_kernel_single_k(a_ref, b_ref, o_ref):
    # K fits in one tile: the MXU accumulates internally inside this dot, so no
    # scratch accumulator, no init/finalize, no per-step read-modify-write.
    o_ref[...] = jnp.dot(a_ref[...], b_ref[...],
                         preferred_element_type=jnp.float32).astype(o_ref.dtype)


def _mm_kernel_acc_in_out(a_ref, b_ref, o_ref):
    # f32 output block is resident across the K ("arbitrary") axis -> accumulate
    # directly into it, saving a (tm, tn) f32 scratch buffer.
    @pl.when(pl.program_id(2) == 0)
    def _init():
        o_ref[...] = jnp.zeros_like(o_ref)

    o_ref[...] += jnp.dot(a_ref[...], b_ref[...],
                          preferred_element_type=jnp.float32)


def _mm_kernel_scratch_acc(a_ref, b_ref, o_ref, acc_ref):
    # Narrow output dtype: accumulate in an f32 scratch, cast once at the end.
    @pl.when(pl.program_id(2) == 0)
    def _init():
        acc_ref[...] = jnp.zeros_like(acc_ref)

    acc_ref[...] += jnp.dot(a_ref[...], b_ref[...],
                            preferred_element_type=jnp.float32)

    @pl.when(pl.program_id(2) == pl.num_programs(2) - 1)
    def _finalize():
        o_ref[...] = acc_ref[...].astype(o_ref.dtype)


# ---------------- wrapper ----------------

@functools.partial(jax.jit, static_argnames=("compute_dtype",))
def matmul(mat1, mat2, compute_dtype=None):
    """torch.mm semantics: (M, K) @ (K, N) -> (M, N).

    Floating-point inputs only (the v7x MXU has no integer path).
    `compute_dtype=jnp.bfloat16` is an opt-in precision/speed trade-off: operands are
    cast to bf16 (halving HBM/VMEM traffic, ~3x MXU throughput on v6e/v7x) while the
    accumulation stays f32.  Default (None) keeps torch.mm float32 numerics.
    """
    M, K = mat1.shape
    K2, N = mat2.shape
    assert K == K2, (mat1.shape, mat2.shape)
    assert (jnp.issubdtype(mat1.dtype, jnp.floating)
            and jnp.issubdtype(mat2.dtype, jnp.floating)), (
        "Pallas MatMul supports floating-point inputs only "
        "(no integer MXU path on v7x).")  # TODO(synk): integer torch.mm semantics.

    out_dtype = jnp.result_type(mat1.dtype, mat2.dtype)
    if compute_dtype is not None:
        mat1 = mat1.astype(compute_dtype)
        mat2 = mat2.astype(compute_dtype)
    in_dtype = jnp.result_type(mat1.dtype, mat2.dtype)
    mat1 = mat1.astype(in_dtype)
    mat2 = mat2.astype(in_dtype)

    sub = _sublane_align(in_dtype)
    tm = _pick_tile(M, 512, sub)       # output-tile row edge (sublane dim of A / out)
    tn = _pick_tile(N, 512, 128)       # lane-dense output width (multiple of 128)
    tk = _pick_tile(K, 2048, 128)      # reduction tile; collapses K grid if K <= 2048

    # v7x has 2 TensorCores: make sure the "parallel" output grid has >= 2 tiles.
    if (pl.cdiv(M, tm) * pl.cdiv(N, tn)) < 2:
        if M > sub:
            tm = _round_up(pl.cdiv(M, 2), sub)
        elif N > 128:
            tn = _round_up(pl.cdiv(N, 2), 128)

    Mp, Np, Kp = _round_up(M, tm), _round_up(N, tn), _round_up(K, tk)
    # Pad only when required (zeros contribute nothing to the contraction).
    a = mat1 if (Mp, Kp) == (M, K) else jnp.pad(mat1, ((0, Mp - M), (0, Kp - K)))
    b = mat2 if (Kp, Np) == (K, N) else jnp.pad(mat2, ((0, Kp - K), (0, Np - N)))

    in_bytes = jnp.dtype(in_dtype).itemsize
    out_bytes = jnp.dtype(out_dtype).itemsize
    cost = pl.CostEstimate(
        flops=2 * M * N * K,
        bytes_accessed=(M * K + K * N) * in_bytes + M * N * out_bytes,
        transcendentals=0)

    gk = Kp // tk
    if gk == 1:
        # 2-D grid: single dot per output tile, K accumulated inside the MXU.
        working = 2 * (tm * Kp + Kp * tn) * in_bytes + 2 * tm * tn * out_bytes
        out = pl.pallas_call(
            _mm_kernel_single_k,
            out_shape=jax.ShapeDtypeStruct((Mp, Np), out_dtype),
            grid_spec=pltpu.PrefetchScalarGridSpec(
                num_scalar_prefetch=0,
                grid=(Mp // tm, Np // tn),
                in_specs=[
                    pl.BlockSpec((tm, Kp), lambda i, j: (i, 0)),
                    pl.BlockSpec((Kp, tn), lambda i, j: (0, j)),
                ],
                out_specs=pl.BlockSpec((tm, tn), lambda i, j: (i, j)),
            ),
            compiler_params=pltpu.CompilerParams(
                dimension_semantics=("parallel", "parallel"),
                vmem_limit_bytes=_vmem_limit(working)),
            cost_estimate=cost,
        )(a, b)
    else:
        use_scratch = out_dtype != jnp.float32
        working = (2 * (tm * tk + tk * tn) * in_bytes
                   + 2 * tm * tn * out_bytes
                   + (tm * tn * 4 if use_scratch else 0))
        kernel = _mm_kernel_scratch_acc if use_scratch else _mm_kernel_acc_in_out
        scratch = [pltpu.VMEM((tm, tn), jnp.float32)] if use_scratch else []
        out = pl.pallas_call(
            kernel,
            out_shape=jax.ShapeDtypeStruct((Mp, Np), out_dtype),
            grid_spec=pltpu.PrefetchScalarGridSpec(
                num_scalar_prefetch=0,
                grid=(Mp // tm, Np // tn, gk),
                in_specs=[
                    pl.BlockSpec((tm, tk), lambda i, j, k: (i, k)),
                    pl.BlockSpec((tk, tn), lambda i, j, k: (k, j)),
                ],
                out_specs=pl.BlockSpec((tm, tn), lambda i, j, k: (i, j)),
                scratch_shapes=scratch,
            ),
            compiler_params=pltpu.CompilerParams(
                dimension_semantics=("parallel", "parallel", "arbitrary"),
                vmem_limit_bytes=_vmem_limit(working)),
            cost_estimate=cost,
        )(a, b)

    if (Mp, Np) != (M, N):
        out = out[:M, :N]
    return out


if __name__ == "__main__":
    key = jax.random.PRNGKey(0)
    k1, k2, k3, k4 = jax.random.split(key, 4)

    # Primary test: (256, 512) @ (512, 256).  Tile picker gives tm=128 (so both v7x
    # TensorCores get a tile), tn=256, tk=512 (K collapsed -> single-dot kernel).
    M, K, N = 256, 512, 256
    mat1 = jax.random.normal(k1, (M, K), jnp.float32)
    mat2 = jax.random.normal(k2, (K, N), jnp.float32)
    # Quantize inputs to bf16-representable f32 so correctness is independent of the
    # compiler-chosen f32->bf16 MXU decomposition (products are exact in the f32 acc).
    mat1 = mat1.astype(jnp.bfloat16).astype(jnp.float32)
    mat2 = mat2.astype(jnp.bfloat16).astype(jnp.float32)

    out = jax.block_until_ready(matmul(mat1, mat2))
    assert out.shape == (M, N), out.shape
    ref = jnp.dot(mat1, mat2, preferred_element_type=jnp.float32,
                  precision=jax.lax.Precision.HIGHEST)
    assert jnp.allclose(out, ref, atol=1e-3, rtol=1e-3), (
        f"max abs diff {jnp.max(jnp.abs(out - ref))}")

    # Ragged / padded case: (96, 192) @ (192, 80) exercises the pad + slice path.
    m2a = jax.random.normal(k3, (96, 192), jnp.float32)
    m2b = jax.random.normal(k4, (192, 80), jnp.float32)
    m2a = m2a.astype(jnp.bfloat16).astype(jnp.float32)
    m2b = m2b.astype(jnp.bfloat16).astype(jnp.float32)
    out2 = jax.block_until_ready(matmul(m2a, m2b))
    ref2 = jnp.dot(m2a, m2b, preferred_element_type=jnp.float32,
                   precision=jax.lax.Precision.HIGHEST)
    assert out2.shape == (96, 80), out2.shape
    assert jnp.allclose(out2, ref2, atol=1e-3, rtol=1e-3), (
        f"max abs diff {jnp.max(jnp.abs(out2 - ref2))}")

    print("KERNEL_OK")
</pallas_src>

<mosaic_0001>
module attributes {stable_mosaic.version = 11 : i64} {
  func.func @_mm_kernel_single_k(%arg0: i32, %arg1: i32, %arg2: memref<128x512xf32, #tpu.memory_space<vmem>>, %arg3: memref<512x256xf32, #tpu.memory_space<vmem>>, %arg4: memref<128x256xf32, #tpu.memory_space<vmem>>) attributes {dimension_semantics = [#tpu.dimension_semantics<parallel>, #tpu.dimension_semantics<parallel>], iteration_bounds = array<i64: 2, 1>, scalar_prefetch = 0 : i64, scratch_operands = 0 : i64, tpu.core_type = #tpu.core_type<tc>, window_params = [{transform_indices = @transform_0, window_bounds = array<i64: 128, 512>}, {transform_indices = @transform_1, window_bounds = array<i64: 512, 256>}, {transform_indices = @transform_2, window_bounds = array<i64: 128, 256>}]} {
    %c0 = arith.constant 0 : index
    %c0_0 = arith.constant 0 : index
    %0 = vector.load %arg2[%c0, %c0_0] : memref<128x512xf32, #tpu.memory_space<vmem>>, vector<128x512xf32>
    %c0_1 = arith.constant 0 : index
    %c0_2 = arith.constant 0 : index
    %1 = vector.load %arg3[%c0_1, %c0_2] : memref<512x256xf32, #tpu.memory_space<vmem>>, vector<512x256xf32>
    %cst = arith.constant dense<0.000000e+00> : vector<128x256xf32>
    %2 = tpu.matmul %0, %1, %cst {dimension_numbers = #tpu.dot_dimension_numbers<[1], [0], [0], [1], [0, 0, 1, 1], [], []>} : vector<128x512xf32>, vector<512x256xf32>, vector<128x256xf32> -> vector<128x256xf32>
    %c0_3 = arith.constant 0 : index
    %c0_4 = arith.constant 0 : index
    %3 = vector.load %arg4[%c0_3, %c0_4] : memref<128x256xf32, #tpu.memory_space<vmem>>, vector<128x256xf32>
    tpu.vector_store %arg4[%c0_3, %c0_4], %2 {strides = array<i32>} : memref<128x256xf32, #tpu.memory_space<vmem>>, vector<128x256xf32>,
    return
  }
  func.func @transform_0(%arg0: i32, %arg1: i32) -> (i32, i32) {
    %c0_i32 = arith.constant 0 : i32
    %c0_i32_0 = arith.constant 0 : i32
    return %arg0, %c0_i32 : i32, i32
  }
  func.func @transform_1(%arg0: i32, %arg1: i32) -> (i32, i32) {
    %c0_i32 = arith.constant 0 : i32
    %c0_i32_0 = arith.constant 0 : i32
    return %c0_i32, %arg1 : i32, i32
  }
  func.func @transform_2(%arg0: i32, %arg1: i32) -> (i32, i32) {
    %c0_i32 = arith.constant 0 : i32
    return %arg0, %arg1 : i32, i32
  }
}

</mosaic_0001>

<bundles_post_ra>
// kernel: matmul.1
= control target key start
LH: loop header
LB: loop body
LE: loop exit
PB: predicated region body
PF: predicated region fallthrough
CT: control target
= control target key end

     0   :  { %7 = vsyncpa [#allocation3], 0  ;;  %s1616_s0 = inlined_call_operand.hbm [shape: f32[256,512], index: 0, kind: input, shape index: {}]   ;;  %s1617_s1 = inlined_call_operand.hbm [shape: f32[512,256], index: 1, kind: input, shape index: {}]   ;;  %s1618_s2 = inlined_call_operand.hbm [shape: f32[256,256], index: 2, kind: output, shape index: {}]  }
   0x1   :  { %9 = vsyncpa [#allocation3 + $0x1], 0 }
   0x2   :  { %10 = vsyncpa [#allocation6], 0 }
   0x3   :  { %11 = vsyncpa [#allocation4], 0 }
   0x4   :  { %13 = vsyncpa [#allocation4 + $0x1], 0  ;;  %s1295_s9 = smov 0   ;;  %s1297_s10 = smov 0  }
   0x5   :  { %s1299_s11 = smov 0   ;;  %s1301_s12 = smov 0  }
   0x6   :  { %s1303_s13 = smov 0   ;;  %s1305_s14 = smov 0  }
   0x7 LB: > { %s863_s15 = sadd.s32 4294967295, %s1269_s14   ;;  %s864_s16 = sadd.s32 4294967294, %s1269_s14   ;;  %s1269_s14 = sphi %s1305_s14, %s19_s14   ;;  %s1265_s13 = sphi %s1303_s13, %s1642_s13   ;;  %s1261_s12 = sphi %s1301_s12, %s1641_s12   ;;  %s1257_s11 = sphi %s1299_s11, %s1640_s11   ;;  %s1253_s10 = sphi %s1297_s10, %s1639_s10   ;;  %s1249_s9 = sphi %s1295_s9, %s1638_s9  }
   0x8   : > { %p51_p0 = scmp.ne.s32.totalorder %s1253_s10, %s1249_s9  ;;  %p1329_p1 = scmp.eq.s32.totalorder %s863_s15, 0 }
   0x9   : > { %p1333_p2 = scmp.eq.s32.totalorder %s863_s15, 1  ;;  %p109_p3 = scmp.eq.s32.totalorder %s864_s16, 1 }
   0xa   : > { %s1623_s17 = scalar_select %p1329_p1, 1, 0 }
   0xb   : > { %s1624_s18 = scalar_select %p1333_p2, 1, 0 }
   0xc   : > { %p1339_p4 = por %p1329_p1, %p51_p0  ;;  %p865_p5 = scmp.ge.s32.totalorder %s1269_s14, 1 }
   0xd   : > { %p1344_p6 = por %p109_p3, %p51_p0  ;;  %p116_p7 = scmp.lt.s32.totalorder %s1269_s14, 3 }
   0xe   : > { %s1625_s19 = scalar_select %p1339_p4, 1, 0 }
   0xf   : > { %s1626_s20 = scalar_select %p1344_p6, 1, 0 }
  0x10   : > { %p1349_p8 = pnand %p865_p5, %p116_p7  ;;  %s1271_s22 = smov [#allocation5]  }
  0x11   : > { %s131_s23 = sshll.u32 %s1271_s22, 4  ;;  %s31_s25 = sadd.s32 1, %s1265_s13  ;;  %s132_s23 = int_to_ptr.vmem [resolvable:$true] %s131_s23 }
  0x12   : > { %s1627_s21 = scalar_select %p1349_p8, 1, 0 }
  0x13   : > { %p1054_p9 = pneg %p1349_p8  ;;  %s1125_s28 = scalar_lea.hbm %s1617_s1, 16384 }
  0x14   : > { %p1126_p12 = scmp.ne.s32.totalorder %s1617_s1, %s1125_s28  ;;  %p1132_p5 = scmp.lt.u32.totalorder %s1125_s28, %s1617_s1 }
  0x15   : > { %p1358_p11 = pnand %p1054_p9, %p1329_p1 }
  0x17   : > { %p1127_p13 = pneg %p1358_p11 }
  0x19   : > { %p1128_p0 = pnand %p1127_p13, %p1126_p12 }
  0x1b   : > { %p1129_p3 = pneg %p1128_p0 }
  0x1d   : > { %p1134_p7 = pnand %p1132_p5, %p1129_p3 }
  0x1f   : > { %1137 = shalt.err (!%p1134_p7)
}
  0x20   : > { %s1138_s5 = scalar_lea.vmem %s132_s23, 16384  ;;  %p1146_p1 = scmp.lt.s32.totalorder %s132_s23, %s132_s23 }
  0x21   : > { %p1139_p9 = scmp.ne.s32.totalorder %s132_s23, %s1138_s5  ;;  %p1147_p4 = scmp.lt.s32.totalorder %s1138_s5, %s1138_s5 }
  0x23   : > { %p1141_p10 = pnand %p1139_p9, %p1127_p13  ;;  %p1148_p8 = por %p1147_p4, %p1146_p1 }
  0x25   : > { %p1142_p6 = pneg %p1141_p10 }
  0x27   : > { %p1149_p2 = pnand %p1148_p8, %p1142_p6 }
  0x29   : > { %1152 = shalt.err (!%p1149_p2)
}
  0x2a   : > { %s1272_s6 = smov 256   ;;  %s1273_s7 = smov 16  }
  0x2b   : > { %1057 = dma.hbm_to_vmem [thread:$0]  (!%p1358_p11), %s1617_s1, 16384, %s132_s23, [#allocation6], %s1272_s6, %s1272_s6, %s1273_s7  }
  0x2c   : > { %p33_p1 = scmp.ge.s32.totalorder %s31_s25, 2  ;;  %s38_s16 = sadd.s32 1, %s1257_s11 }
  0x2d   : > { %p45_p2 = scmp.ne.s32.totalorder %s1257_s11, %s1253_s10  ;;  %p46_p4 = scmp.eq.s32.totalorder %s1269_s14, 0 }
  0x2e   : > { %s1644_s25 = smov (%p33_p1, %s31_s25), 0  ;;  %p1630_p8 = scmp.ne.s32.totalorder %s1624_s18, 0 }
  0x2f   : > { %p1385_p6 = por %p46_p4, %p45_p2  ;;  %s35_s24 = ssub.s32 %s1265_s13, %s1644_s25 }
  0x30   : > { %p1391_p10 = por %p1630_p8, %p45_p2  ;;  %p1067_p12 = scmp.lt.s32.totalorder %s1269_s14, 2 }
  0x31   : > { %p36_p11 = scmp.eq.s32.totalorder %s35_s24, 0  ;;  %s145_s23 = sand.u32 1, %s1257_s11  }
  0x32   : > { %s868_s27 = sshll.u32 %s145_s23, 9  ;;  %s883_s29 = sshll.u32 %s1265_s13, 13 }
  0x33   : > { %s1400_s28 = scalar_select %p36_p11, %s1257_s11, %s38_s16  }
  0x34   : > { %s1406_s4 = scalar_lea.hbm %s1616_s0, %s883_s29  ;;  %s149_s18 = scalar_lea.vmem [#allocation2], %s868_s27 }
  0x35   : > { %s157_s5 = sshll.u32 %s149_s18, 4  ;;  %p1412_p13 = pnand %p1067_p12, %p1385_p6  ;;  %s1408_s5 = int_to_ptr.vmem [resolvable:$true] %s157_s5 }
  0x36   : > { %s1416_s7 = scalar_lea.sflag [#allocation3], %s145_s23  ;;  %s1153_s8 = scalar_lea.hbm %s1406_s4, 8192 }
  0x37   : > { %p1154_p0 = scmp.ne.s32.totalorder %s1406_s4, %s1153_s8  ;;  %p1155_p3 = pneg %p1412_p13 }
  0x38   : > { %s1158_s22 = scalar_lea.hbm %s1616_s0, 16384  ;;  %p1159_p9 = scmp.lt.u32.totalorder %s1406_s4, %s1616_s0 }
  0x39   : > { %p1156_p5 = pnand %p1155_p3, %p1154_p0  ;;  %p1160_p1 = scmp.lt.u32.totalorder %s1158_s22, %s1153_s8 }
  0x3a   : > { %p1162_p4 = scmp.lt.u32.totalorder %s1153_s8, %s1406_s4 }
  0x3b   : > { %p1157_p7 = pneg %p1156_p5  ;;  %p1161_p2 = por %p1160_p1, %p1159_p9 }
  0x3d   : > { %p1163_p6 = por %p1162_p4, %p1161_p2 }
  0x3f   : > { %p1164_p8 = pnand %p1163_p6, %p1157_p7 }
  0x41   : > { %1167 = shalt.err (!%p1164_p8)
}
  0x42   : > { %s1168_s23 = scalar_lea.vmem %s1408_s5, 8192  ;;  %s1274_s29 = smov [#allocation2]  }
  0x43   : > { %p1169_p12 = scmp.ne.s32.totalorder %s1408_s5, %s1168_s23  ;;  %s1173_s30 = sshll.u32 %s1274_s29, 4  ;;  %s1174_s30 = int_to_ptr.vmem [resolvable:$false] %s1173_s30 }
  0x44   : > { %s1175_s3 = scalar_lea.vmem %s1174_s30, 16384  ;;  %p1176_p5 = scmp.lt.s32.totalorder %s1408_s5, %s1174_s30 }
  0x45   : > { %p1171_p11 = pnand %p1169_p12, %p1155_p3  ;;  %p1177_p9 = scmp.lt.s32.totalorder %s1175_s3, %s1168_s23 }
  0x47   : > { %p1172_p0 = pneg %p1171_p11  ;;  %p1178_p1 = por %p1177_p9, %p1176_p5 }
  0x49   : > { %p1179_p2 = pnand %p1178_p1, %p1172_p0 }
  0x4b   : > { %1182 = shalt.err (!%p1179_p2)
}
  0x4c   : > { %s1275_s18 = smov 512   ;;  %s1276_s8 = smov 32  }
  0x4d   : > { %1061 = dma.hbm_to_vmem [thread:$0]  (!%p1412_p13), %s1406_s4, 8192, %s1408_s5, %s1416_s7, %s1275_s18, %s1275_s18, %s1276_s8  }
  0x4e   : > { %p1633_p3 = scmp.ne.s32.totalorder %s1627_s21, 0 }
  0x4f   : > { %s1447_s15 = sand.u32 (!%p1633_p3), 1, %s1253_s10   ;;  %p1634_p7 = scmp.ne.s32.totalorder (!%p1633_p3), %s1625_s19, 0 }
  0x50   : > { %169 = sbr.rel (%p1633_p3) target bundleno = 450 (0x1c2), region = 28  ;;  %s873_s16 = sshll.u32 (!%p1633_p3), %s1447_s15, 9 }
  0x51   : > { %s172_s22 = scalar_lea.sflag (!%p1633_p3), [#allocation3], %s1447_s15  ;;  %s1451_s24 = scalar_lea.vmem (!%p1633_p3), [#allocation2], %s873_s16 }
  0x57   : > { %1236 = dma.done.wait (%p1634_p7), %s172_s22, 8192  }
  0x58   : > { %1238 = vsyncadd (%p1634_p7), %s172_s22, 4294959104  ;;  %p1635_p13 = scmp.ne.s32.totalorder %s1623_s17, 0 }
  0x5a   : > { %1240 = dma.done.wait (%p1635_p13), [#allocation6], 16384  }
  0x5b   : > { %1242 = vsyncadd (%p1635_p13), [#allocation6], 4294950912  ;;  %v269_v0 = vld [vmem:[#allocation5 + $0x8] sm:$0xff]  ;;  %v271_v1 = vld [vmem:[#allocation5 + $0x18] sm:$0xff]  ;;  %s875_s17 = sshll.u32 %s1447_s15, 8  ;;  %s885_s21 = sshll.u32 %s1261_s12, 12 }
  0x5c   : > { %v333_v2 = vld [vmem:[#allocation5 + $0x208] sm:$0xff]  ;;  %v886_v3 = vpack.c.bf16 %v271_v1, %v269_v0  ;;  %v335_v4 = vld [vmem:[#allocation5 + $0x218] sm:$0xff]  ;;  %v268_v5 = vld [vmem:[#allocation5] sm:$0xff]  ;;  %s1526_s19 = scalar_lea.vmem [#allocation7], %s875_s17  ;;  %s1563_s7 = scalar_lea.hbm %s1618_s2, %s885_s21 }
  0x5d   : > { %v270_v6 = vld [vmem:[#allocation5 + $0x10] sm:$0xff]  ;;  %v950_v7 = vpack.c.bf16 %v335_v4, %v333_v2  ;;  %v332_v9 = vld [vmem:[#allocation5 + $0x200] sm:$0xff]  ;;  %v273_v11 = vld [vmem:[#allocation5 + $0x28] sm:$0xff]  ;;  %s767_s4 = sshll.u32 %s1526_s19, 4  ;;  %s751_s12 = scalar_lea.sflag [#allocation4], %s1447_s15  ;;  %s1565_s4 = int_to_ptr.vmem [resolvable:$true] %s767_s4 }
  0x5e   : > { %v888_v8 = vpack.c.bf16 %v270_v6, %v268_v5  ;;  %v334_v10 = vld [vmem:[#allocation5 + $0x210] sm:$0xff]  ;;  %887 = vmatprep.subr.bf16.mxu1 %v886_v3  ;;  %v275_v13 = vld [vmem:[#allocation5 + $0x38] sm:$0xff]  ;;  %v337_v14 = vld [vmem:[#allocation5 + $0x228] sm:$0xff]  ;;  %s1183_s27 = scalar_lea.vmem %s1565_s4, 4096  ;;  %s1277_s23 = smov [#allocation7]  }
  0x5f   : > { %v952_v12 = vpack.c.bf16 %v334_v10, %v332_v9  ;;  %v339_v15 = vld [vmem:[#allocation5 + $0x238] sm:$0xff]  ;;  %951 = vmatprep.subr.bf16.mxu0 %v950_v7  ;;  %v890_v16 = vpack.c.bf16 %v275_v13, %v273_v11  ;;  %v272_v18 = vld [vmem:[#allocation5 + $0x20] sm:$0xff]  ;;  %v274_v19 = vld [vmem:[#allocation5 + $0x30] sm:$0xff]  ;;  %p1184_p4 = scmp.ne.s32.totalorder %s1565_s4, %s1183_s27  ;;  %s1187_s29 = sshll.u32 %s1277_s23, 4  ;;  %s1188_s29 = int_to_ptr.vmem [resolvable:$false] %s1187_s29 }
  0x60   : > { %889 = vmatpush1.bf16.msra.mxu1 %v888_v8  ;;  %v954_v17 = vpack.c.bf16 %v339_v15, %v337_v14  ;;  %v336_v20 = vld [vmem:[#allocation5 + $0x220] sm:$0xff]  ;;  %v892_v21 = vpack.c.bf16 %v274_v19, %v272_v18  ;;  %v338_v22 = vld [vmem:[#allocation5 + $0x230] sm:$0xff]  ;;  %v277_v23 = vld [vmem:[#allocation5 + $0x48] sm:$0xff]  ;;  %s1189_s30 = scalar_lea.vmem %s1188_s29, 8192  ;;  %p1190_p12 = scmp.lt.s32.totalorder %s1565_s4, %s1188_s29 }
  0x61   : > { %953 = vmatpush1.bf16.msra.mxu0 %v952_v12  ;;  %v279_v24 = vld [vmem:[#allocation5 + $0x58] sm:$0xff]  ;;  %891 = vmatprep.subr.bf16.mxu1 %v890_v16  ;;  %v956_v25 = vpack.c.bf16 %v338_v22, %v336_v20  ;;  %v341_v27 = vld [vmem:[#allocation5 + $0x248] sm:$0xff]  ;;  %v276_v29 = vld [vmem:[#allocation5 + $0x40] sm:$0xff]  ;;  %p1185_p6 = pnand %p1184_p4, %p1391_p10  ;;  %p1191_p11 = scmp.lt.s32.totalorder %s1189_s30, %s1183_s27 }
  0x62   : > { %955 = vmatprep.subr.bf16.mxu0 %v954_v17  ;;  %v894_v26 = vpack.c.bf16 %v279_v24, %v277_v23  ;;  %v343_v28 = vld [vmem:[#allocation5 + $0x258] sm:$0xff]  ;;  %v278_v31 = vld [vmem:[#allocation5 + $0x50] sm:$0xff]  ;;  %v340_v32 = vld [vmem:[#allocation5 + $0x240] sm:$0xff] }
  0x63   : > { %v958_v30 = vpack.c.bf16 %v343_v28, %v341_v27  ;;  %v342_v33 = vld [vmem:[#allocation5 + $0x250] sm:$0xff]  ;;  %v896_v34 = vpack.c.bf16 %v278_v31, %v276_v29  ;;  %v281_v35 = vld [vmem:[#allocation5 + $0x68] sm:$0xff]  ;;  %v283_v36 = vld [vmem:[#allocation5 + $0x78] sm:$0xff]  ;;  %p1186_p8 = pneg %p1185_p6  ;;  %p1192_p0 = por %p1191_p11, %p1190_p12 }
  0x64   : > { %893 = vmatpush1.bf16.msra.mxu1 %v892_v21  ;;  %v345_v37 = vld [vmem:[#allocation5 + $0x268] sm:$0xff]  ;;  %v960_v38 = vpack.c.bf16 %v342_v33, %v340_v32  ;;  %v898_v39 = vpack.c.bf16 %v283_v36, %v281_v35  ;;  %v347_v40 = vld [vmem:[#allocation5 + $0x278] sm:$0xff]  ;;  %v280_v41 = vld [vmem:[#allocation5 + $0x60] sm:$0xff] }
  0x65   : > { %957 = vmatpush1.bf16.msra.mxu0 %v956_v25  ;;  %895 = vmatprep.subr.bf16.mxu1 %v894_v26  ;;  %v282_v42 = vld [vmem:[#allocation5 + $0x70] sm:$0xff]  ;;  %v962_v43 = vpack.c.bf16 %v347_v40, %v345_v37  ;;  %v344_v44 = vld [vmem:[#allocation5 + $0x260] sm:$0xff]  ;;  %v285_v46 = vld [vmem:[#allocation5 + $0x88] sm:$0xff]  ;;  %p1193_p5 = pnand %p1192_p0, %p1186_p8 }
  0x66   : > { %959 = vmatprep.subr.bf16.mxu0 %v958_v30  ;;  %v346_v45 = vld [vmem:[#allocation5 + $0x270] sm:$0xff]  ;;  %v287_v47 = vld [vmem:[#allocation5 + $0x98] sm:$0xff]  ;;  %v349_v48 = vld [vmem:[#allocation5 + $0x288] sm:$0xff]  ;;  %v900_v50 = vpack.c.bf16 %v282_v42, %v280_v41 }
  0x67   : > { %v351_v49 = vld [vmem:[#allocation5 + $0x298] sm:$0xff]  ;;  %v964_v51 = vpack.c.bf16 %v346_v45, %v344_v44  ;;  %v902_v52 = vpack.c.bf16 %v287_v47, %v285_v46  ;;  %v284_v53 = vld [vmem:[#allocation5 + $0x80] sm:$0xff]  ;;  %v286_v54 = vld [vmem:[#allocation5 + $0x90] sm:$0xff] }
  0x68   : > { %897 = vmatpush1.bf16.msra.mxu1 %v896_v34  ;;  %v348_v55 = vld [vmem:[#allocation5 + $0x280] sm:$0xff]  ;;  %v966_v56 = vpack.c.bf16 %v351_v49, %v349_v48  ;;  %v350_v57 = vld [vmem:[#allocation5 + $0x290] sm:$0xff]  ;;  %v289_v58 = vld [vmem:[#allocation5 + $0xa8] sm:$0xff]  ;;  %v904_v62 = vpack.c.bf16 %v286_v54, %v284_v53 }
  0x69   : > { %961 = vmatpush1.bf16.msra.mxu0 %v960_v38  ;;  %899 = vmatprep.subr.bf16.mxu1 %v898_v39  ;;  %v291_v59 = vld [vmem:[#allocation5 + $0xb8] sm:$0xff]  ;;  %v353_v60 = vld [vmem:[#allocation5 + $0x2a8] sm:$0xff]  ;;  %v968_v63 = vpack.c.bf16 %v350_v57, %v348_v55  ;;  %v288_v1 = vld [vmem:[#allocation5 + $0xa0] sm:$0xff] }
  0x6a   : > { %963 = vmatprep.subr.bf16.mxu0 %v962_v43  ;;  %v355_v61 = vld [vmem:[#allocation5 + $0x2b8] sm:$0xff]  ;;  %v906_v0 = vpack.c.bf16 %v291_v59, %v289_v58  ;;  %v290_v2 = vld [vmem:[#allocation5 + $0xb0] sm:$0xff]  ;;  %v352_v3 = vld [vmem:[#allocation5 + $0x2a0] sm:$0xff] }
  0x6b   : > { %v970_v4 = vpack.c.bf16 %v355_v61, %v353_v60  ;;  %v354_v5 = vld [vmem:[#allocation5 + $0x2b0] sm:$0xff]  ;;  %v293_v6 = vld [vmem:[#allocation5 + $0xc8] sm:$0xff]  ;;  %v295_v7 = vld [vmem:[#allocation5 + $0xd8] sm:$0xff]  ;;  %v908_v10 = vpack.c.bf16 %v290_v2, %v288_v1 }
  0x6c   : > { %901 = vmatpush1.bf16.msra.mxu1 %v900_v50  ;;  %v357_v8 = vld [vmem:[#allocation5 + $0x2c8] sm:$0xff]  ;;  %v359_v9 = vld [vmem:[#allocation5 + $0x2d8] sm:$0xff]  ;;  %v972_v11 = vpack.c.bf16 %v354_v5, %v352_v3  ;;  %v910_v12 = vpack.c.bf16 %v295_v7, %v293_v6  ;;  %v292_v13 = vld [vmem:[#allocation5 + $0xc0] sm:$0xff] }
  0x6d   : > { %965 = vmatpush1.bf16.msra.mxu0 %v964_v51  ;;  %903 = vmatprep.subr.bf16.mxu1 %v902_v52  ;;  %v294_v14 = vld [vmem:[#allocation5 + $0xd0] sm:$0xff]  ;;  %v356_v15 = vld [vmem:[#allocation5 + $0x2c0] sm:$0xff]  ;;  %v974_v16 = vpack.c.bf16 %v359_v9, %v357_v8  ;;  %v297_v18 = vld [vmem:[#allocation5 + $0xe8] sm:$0xff] }
  0x6e   : > { %967 = vmatprep.subr.bf16.mxu0 %v966_v56  ;;  %v358_v17 = vld [vmem:[#allocation5 + $0x2d0] sm:$0xff]  ;;  %v299_v19 = vld [vmem:[#allocation5 + $0xf8] sm:$0xff]  ;;  %v361_v20 = vld [vmem:[#allocation5 + $0x2e8] sm:$0xff]  ;;  %v912_v22 = vpack.c.bf16 %v294_v14, %v292_v13 }
  0x6f   : > { %v363_v21 = vld [vmem:[#allocation5 + $0x2f8] sm:$0xff]  ;;  %v976_v23 = vpack.c.bf16 %v358_v17, %v356_v15  ;;  %v914_v24 = vpack.c.bf16 %v299_v19, %v297_v18  ;;  %v296_v25 = vld [vmem:[#allocation5 + $0xe0] sm:$0xff]  ;;  %v298_v26 = vld [vmem:[#allocation5 + $0xf0] sm:$0xff] }
  0x70   : > { %905 = vmatpush1.bf16.msra.mxu1 %v904_v62  ;;  %v360_v27 = vld [vmem:[#allocation5 + $0x2e0] sm:$0xff]  ;;  %v978_v28 = vpack.c.bf16 %v363_v21, %v361_v20  ;;  %v362_v29 = vld [vmem:[#allocation5 + $0x2f0] sm:$0xff]  ;;  %v301_v30 = vld [vmem:[#allocation5 + $0x108] sm:$0xff]  ;;  %v916_v34 = vpack.c.bf16 %v298_v26, %v296_v25 }
  0x71   : > { %969 = vmatpush1.bf16.msra.mxu0 %v968_v63  ;;  %907 = vmatprep.subr.bf16.mxu1 %v906_v0  ;;  %v303_v31 = vld [vmem:[#allocation5 + $0x118] sm:$0xff]  ;;  %v365_v32 = vld [vmem:[#allocation5 + $0x308] sm:$0xff]  ;;  %v980_v35 = vpack.c.bf16 %v362_v29, %v360_v27  ;;  %v300_v37 = vld [vmem:[#allocation5 + $0x100] sm:$0xff] }
  0x72   : > { %971 = vmatprep.subr.bf16.mxu0 %v970_v4  ;;  %v367_v33 = vld [vmem:[#allocation5 + $0x318] sm:$0xff]  ;;  %v918_v36 = vpack.c.bf16 %v303_v31, %v301_v30  ;;  %v302_v38 = vld [vmem:[#allocation5 + $0x110] sm:$0xff]  ;;  %v364_v39 = vld [vmem:[#allocation5 + $0x300] sm:$0xff] }
  0x73   : > { %v982_v40 = vpack.c.bf16 %v367_v33, %v365_v32  ;;  %v366_v41 = vld [vmem:[#allocation5 + $0x310] sm:$0xff]  ;;  %v305_v42 = vld [vmem:[#allocation5 + $0x128] sm:$0xff]  ;;  %v307_v43 = vld [vmem:[#allocation5 + $0x138] sm:$0xff]  ;;  %v920_v46 = vpack.c.bf16 %v302_v38, %v300_v37 }
  0x74   : > { %909 = vmatpush1.bf16.msra.mxu1 %v908_v10  ;;  %v369_v44 = vld [vmem:[#allocation5 + $0x328] sm:$0xff]  ;;  %v371_v45 = vld [vmem:[#allocation5 + $0x338] sm:$0xff]  ;;  %v984_v47 = vpack.c.bf16 %v366_v41, %v364_v39  ;;  %v922_v48 = vpack.c.bf16 %v307_v43, %v305_v42  ;;  %v304_v49 = vld [vmem:[#allocation5 + $0x120] sm:$0xff] }
  0x75   : > { %973 = vmatpush1.bf16.msra.mxu0 %v972_v11  ;;  %911 = vmatprep.subr.bf16.mxu1 %v910_v12  ;;  %v306_v50 = vld [vmem:[#allocation5 + $0x130] sm:$0xff]  ;;  %v368_v51 = vld [vmem:[#allocation5 + $0x320] sm:$0xff]  ;;  %v986_v52 = vpack.c.bf16 %v371_v45, %v369_v44  ;;  %v309_v54 = vld [vmem:[#allocation5 + $0x148] sm:$0xff] }
  0x76   : > { %975 = vmatprep.subr.bf16.mxu0 %v974_v16  ;;  %v370_v53 = vld [vmem:[#allocation5 + $0x330] sm:$0xff]  ;;  %v311_v55 = vld [vmem:[#allocation5 + $0x158] sm:$0xff]  ;;  %v373_v56 = vld [vmem:[#allocation5 + $0x348] sm:$0xff]  ;;  %v924_v58 = vpack.c.bf16 %v306_v50, %v304_v49 }
  0x77   : > { %v375_v57 = vld [vmem:[#allocation5 + $0x358] sm:$0xff]  ;;  %v988_v59 = vpack.c.bf16 %v370_v53, %v368_v51  ;;  %v926_v60 = vpack.c.bf16 %v311_v55, %v309_v54  ;;  %v308_v61 = vld [vmem:[#allocation5 + $0x140] sm:$0xff]  ;;  %v310_v62 = vld [vmem:[#allocation5 + $0x150] sm:$0xff] }
  0x78   : > { %913 = vmatpush1.bf16.msra.mxu1 %v912_v22  ;;  %v372_v63 = vld [vmem:[#allocation5 + $0x340] sm:$0xff]  ;;  %v990_v0 = vpack.c.bf16 %v375_v57, %v373_v56  ;;  %v374_v1 = vld [vmem:[#allocation5 + $0x350] sm:$0xff]  ;;  %v313_v2 = vld [vmem:[#allocation5 + $0x168] sm:$0xff]  ;;  %v928_v6 = vpack.c.bf16 %v310_v62, %v308_v61 }
  0x79   : > { %977 = vmatpush1.bf16.msra.mxu0 %v976_v23  ;;  %915 = vmatprep.subr.bf16.mxu1 %v914_v24  ;;  %v315_v3 = vld [vmem:[#allocation5 + $0x178] sm:$0xff]  ;;  %v377_v4 = vld [vmem:[#allocation5 + $0x368] sm:$0xff]  ;;  %v312_v7 = vld [vmem:[#allocation5 + $0x160] sm:$0xff]  ;;  %v992_v8 = vpack.c.bf16 %v374_v1, %v372_v63 }
  0x7a   : > { %979 = vmatprep.subr.bf16.mxu0 %v978_v28  ;;  %v379_v5 = vld [vmem:[#allocation5 + $0x378] sm:$0xff]  ;;  %v930_v9 = vpack.c.bf16 %v315_v3, %v313_v2  ;;  %v314_v10 = vld [vmem:[#allocation5 + $0x170] sm:$0xff]  ;;  %v376_v11 = vld [vmem:[#allocation5 + $0x360] sm:$0xff] }
  0x7b   : > { %v378_v12 = vld [vmem:[#allocation5 + $0x370] sm:$0xff]  ;;  %v994_v13 = vpack.c.bf16 %v379_v5, %v377_v4  ;;  %v317_v14 = vld [vmem:[#allocation5 + $0x188] sm:$0xff]  ;;  %v319_v15 = vld [vmem:[#allocation5 + $0x198] sm:$0xff]  ;;  %v932_v20 = vpack.c.bf16 %v314_v10, %v312_v7 }
  0x7c   : > { %917 = vmatpush1.bf16.msra.mxu1 %v916_v34  ;;  %v205_v16 = vld [vmem:[%s1451_s24 + $0x8] sm:$0xff]  ;;  %v383_v18 = vld [vmem:[#allocation5 + $0x398] sm:$0xff]  ;;  %v996_v21 = vpack.c.bf16 %v378_v12, %v376_v11  ;;  %v934_v22 = vpack.c.bf16 %v319_v15, %v317_v14  ;;  %v316_v23 = vld [vmem:[#allocation5 + $0x180] sm:$0xff] }
  0x7d   : > { %981 = vmatpush1.bf16.msra.mxu0 %v980_v35  ;;  %919 = vmatprep.subr.bf16.mxu1 %v918_v36  ;;  %v381_v17 = vld [vmem:[#allocation5 + $0x388] sm:$0xff]  ;;  %v207_v19 = vld [vmem:[%s1451_s24 + $0x18] sm:$0xff]  ;;  %v318_v24 = vld [vmem:[#allocation5 + $0x190] sm:$0xff] }
  0x7e   : > { %983 = vmatprep.subr.bf16.mxu0 %v982_v40  ;;  %460 = vmatprep.mubr.f32.mxu1 %v205_v16  ;;  %v380_v25 = vld [vmem:[#allocation5 + $0x380] sm:$0xff]  ;;  %v998_v26 = vpack.c.bf16 %v383_v18, %v381_v17  ;;  %v382_v27 = vld [vmem:[#allocation5 + $0x390] sm:$0xff]  ;;  %v321_v28 = vld [vmem:[#allocation5 + $0x1a8] sm:$0xff]  ;;  %v936_v32 = vpack.c.bf16 %v318_v24, %v316_v23 }
  0x7f   : > { %621 = vmatprep.mubr.f32.mxu0 %v207_v19  ;;  %v323_v29 = vld [vmem:[#allocation5 + $0x1b8] sm:$0xff]  ;;  %v385_v30 = vld [vmem:[#allocation5 + $0x3a8] sm:$0xff]  ;;  %v1000_v33 = vpack.c.bf16 %v382_v27, %v380_v25  ;;  %v320_v35 = vld [vmem:[#allocation5 + $0x1a0] sm:$0xff] }
  0x80   : > { %921 = vmatpush1.bf16.msra.mxu1 %v920_v46  ;;  %v387_v31 = vld [vmem:[#allocation5 + $0x3b8] sm:$0xff]  ;;  %v938_v34 = vpack.c.bf16 %v323_v29, %v321_v28  ;;  %v322_v36 = vld [vmem:[#allocation5 + $0x1b0] sm:$0xff]  ;;  %v384_v37 = vld [vmem:[#allocation5 + $0x3a0] sm:$0xff] }
  0x81   : > { %985 = vmatpush1.bf16.msra.mxu0 %v984_v47  ;;  %923 = vmatprep.subr.bf16.mxu1 %v922_v48  ;;  %v1002_v38 = vpack.c.bf16 %v387_v31, %v385_v30  ;;  %v386_v39 = vld [vmem:[#allocation5 + $0x3b0] sm:$0xff]  ;;  %v325_v40 = vld [vmem:[#allocation5 + $0x1c8] sm:$0xff]  ;;  %v327_v41 = vld [vmem:[#allocation5 + $0x1d8] sm:$0xff]  ;;  %v940_v44 = vpack.c.bf16 %v322_v36, %v320_v35 }
  0x82   : > { %987 = vmatprep.subr.bf16.mxu0 %v986_v52  ;;  %v389_v42 = vld [vmem:[#allocation5 + $0x3c8] sm:$0xff]  ;;  %v391_v43 = vld [vmem:[#allocation5 + $0x3d8] sm:$0xff]  ;;  %v1004_v45 = vpack.c.bf16 %v386_v39, %v384_v37  ;;  %v942_v46 = vpack.c.bf16 %v327_v41, %v325_v40  ;;  %v324_v47 = vld [vmem:[#allocation5 + $0x1c0] sm:$0xff] }
  0x83   : > { %v326_v48 = vld [vmem:[#allocation5 + $0x1d0] sm:$0xff]  ;;  %v388_v49 = vld [vmem:[#allocation5 + $0x3c0] sm:$0xff]  ;;  %v1006_v50 = vpack.c.bf16 %v391_v43, %v389_v42  ;;  %v329_v52 = vld [vmem:[#allocation5 + $0x1e8] sm:$0xff] }
  0x84   : > { %925 = vmatpush1.bf16.msra.mxu1 %v924_v58  ;;  %v390_v51 = vld [vmem:[#allocation5 + $0x3d0] sm:$0xff]  ;;  %v331_v53 = vld [vmem:[#allocation5 + $0x1f8] sm:$0xff]  ;;  %v393_v54 = vld [vmem:[#allocation5 + $0x3e8] sm:$0xff]  ;;  %v944_v56 = vpack.c.bf16 %v326_v48, %v324_v47 }
  0x85   : > { %989 = vmatpush1.bf16.msra.mxu0 %v988_v59  ;;  %927 = vmatprep.subr.bf16.mxu1 %v926_v60  ;;  %v395_v55 = vld [vmem:[#allocation5 + $0x3f8] sm:$0xff]  ;;  %v1008_v57 = vpack.c.bf16 %v390_v51, %v388_v49  ;;  %v946_v58 = vpack.c.bf16 %v331_v53, %v329_v52  ;;  %v328_v59 = vld [vmem:[#allocation5 + $0x1e0] sm:$0xff]  ;;  %v330_v60 = vld [vmem:[#allocation5 + $0x1f0] sm:$0xff] }
  0x86   : > { %991 = vmatprep.subr.bf16.mxu0 %v990_v0  ;;  %v1010_v61 = vpack.c.bf16 %v395_v55, %v393_v54  ;;  %v392_v62 = vld [vmem:[#allocation5 + $0x3e0] sm:$0xff]  ;;  %v394_v63 = vld [vmem:[#allocation5 + $0x3f0] sm:$0xff]  ;;  %v948_v0 = vpack.c.bf16 %v330_v60, %v328_v59  ;;  %v209_v4 = vld [vmem:[%s1451_s24 + $0x28] sm:$0xff] }
  0x87   : > { %v1012_v1 = vpack.c.bf16 %v394_v63, %v392_v62  ;;  %v204_v2 = vld [vmem:[%s1451_s24] sm:$0xff]  ;;  %v206_v3 = vld [vmem:[%s1451_s24 + $0x10] sm:$0xff]  ;;  %v211_v5 = vld [vmem:[%s1451_s24 + $0x38] sm:$0xff] }
  0x88   : > { %929 = vmatpush1.bf16.msra.mxu1 %v928_v6  ;;  %v208_v6 = vld [vmem:[%s1451_s24 + $0x20] sm:$0xff]  ;;  %v210_v7 = vld [vmem:[%s1451_s24 + $0x30] sm:$0xff]  ;;  %v217_v12 = vld [vmem:[%s1451_s24 + $0x68] sm:$0xff] }
  0x89   : > { %993 = vmatpush1.bf16.msra.mxu0 %v992_v8  ;;  %931 = vmatprep.subr.bf16.mxu1 %v930_v9  ;;  %v213_v8 = vld [vmem:[%s1451_s24 + $0x48] sm:$0xff]  ;;  %v215_v9 = vld [vmem:[%s1451_s24 + $0x58] sm:$0xff]  ;;  %v212_v10 = vld [vmem:[%s1451_s24 + $0x40] sm:$0xff] }
  0x8a   : > { %995 = vmatprep.subr.bf16.mxu0 %v994_v13  ;;  %v214_v11 = vld [vmem:[%s1451_s24 + $0x50] sm:$0xff]  ;;  %v219_v13 = vld [vmem:[%s1451_s24 + $0x78] sm:$0xff]  ;;  %v216_v14 = vld [vmem:[%s1451_s24 + $0x60] sm:$0xff] }
  0x8b   : > { %v218_v15 = vld [vmem:[%s1451_s24 + $0x70] sm:$0xff]  ;;  %v221_v16 = vld [vmem:[%s1451_s24 + $0x88] sm:$0xff]  ;;  %v223_v17 = vld [vmem:[%s1451_s24 + $0x98] sm:$0xff] }
  0x8c   : > { %933 = vmatpush1.bf16.msra.mxu1 %v932_v20  ;;  %v220_v18 = vld [vmem:[%s1451_s24 + $0x80] sm:$0xff]  ;;  %v222_v19 = vld [vmem:[%s1451_s24 + $0x90] sm:$0xff]  ;;  %v225_v20 = vld [vmem:[%s1451_s24 + $0xa8] sm:$0xff] }
  0x8d   : > { %997 = vmatpush1.bf16.msra.mxu0 %v996_v21  ;;  %935 = vmatprep.subr.bf16.mxu1 %v934_v22  ;;  %v227_v21 = vld [vmem:[%s1451_s24 + $0xb8] sm:$0xff]  ;;  %v224_v22 = vld [vmem:[%s1451_s24 + $0xa0] sm:$0xff]  ;;  %v226_v23 = vld [vmem:[%s1451_s24 + $0xb0] sm:$0xff] }
  0x8e   : > { %999 = vmatprep.subr.bf16.mxu0 %v998_v26  ;;  %v229_v24 = vld [vmem:[%s1451_s24 + $0xc8] sm:$0xff]  ;;  %v231_v25 = vld [vmem:[%s1451_s24 + $0xd8] sm:$0xff]  ;;  %v228_v26 = vld [vmem:[%s1451_s24 + $0xc0] sm:$0xff] }
  0x8f   : > { %v230_v27 = vld [vmem:[%s1451_s24 + $0xd0] sm:$0xff]  ;;  %v233_v28 = vld [vmem:[%s1451_s24 + $0xe8] sm:$0xff]  ;;  %v235_v29 = vld [vmem:[%s1451_s24 + $0xf8] sm:$0xff] }
  0x90   : > { %937 = vmatpush1.bf16.msra.mxu1 %v936_v32  ;;  %v232_v30 = vld [vmem:[%s1451_s24 + $0xe0] sm:$0xff]  ;;  %v234_v31 = vld [vmem:[%s1451_s24 + $0xf0] sm:$0xff]  ;;  %v237_v32 = vld [vmem:[%s1451_s24 + $0x108] sm:$0xff] }
  0x91   : > { %1001 = vmatpush1.bf16.msra.mxu0 %v1000_v33  ;;  %939 = vmatprep.subr.bf16.mxu1 %v938_v34  ;;  %v239_v33 = vld [vmem:[%s1451_s24 + $0x118] sm:$0xff]  ;;  %v236_v34 = vld [vmem:[%s1451_s24 + $0x100] sm:$0xff]  ;;  %v238_v35 = vld [vmem:[%s1451_s24 + $0x110] sm:$0xff] }
  0x92   : > { %1003 = vmatprep.subr.bf16.mxu0 %v1002_v38  ;;  %v241_v36 = vld [vmem:[%s1451_s24 + $0x128] sm:$0xff]  ;;  %v243_v37 = vld [vmem:[%s1451_s24 + $0x138] sm:$0xff]  ;;  %v240_v38 = vld [vmem:[%s1451_s24 + $0x120] sm:$0xff] }
  0x93   : > { %v242_v39 = vld [vmem:[%s1451_s24 + $0x130] sm:$0xff]  ;;  %v245_v40 = vld [vmem:[%s1451_s24 + $0x148] sm:$0xff]  ;;  %v247_v41 = vld [vmem:[%s1451_s24 + $0x158] sm:$0xff] }
  0x94   : > { %941 = vmatpush1.bf16.msra.mxu1 %v940_v44  ;;  %v244_v42 = vld [vmem:[%s1451_s24 + $0x140] sm:$0xff]  ;;  %v246_v43 = vld [vmem:[%s1451_s24 + $0x150] sm:$0xff]  ;;  %v249_v44 = vld [vmem:[%s1451_s24 + $0x168] sm:$0xff] }
  0x95   : > { %1005 = vmatpush1.bf16.msra.mxu0 %v1004_v45  ;;  %943 = vmatprep.subr.bf16.mxu1 %v942_v46  ;;  %v251_v45 = vld [vmem:[%s1451_s24 + $0x178] sm:$0xff]  ;;  %v248_v46 = vld [vmem:[%s1451_s24 + $0x160] sm:$0xff]  ;;  %v250_v47 = vld [vmem:[%s1451_s24 + $0x170] sm:$0xff] }
  0x96   : > { %1007 = vmatprep.subr.bf16.mxu0 %v1006_v50  ;;  %v253_v48 = vld [vmem:[%s1451_s24 + $0x188] sm:$0xff]  ;;  %v255_v49 = vld [vmem:[%s1451_s24 + $0x198] sm:$0xff]  ;;  %v252_v50 = vld [vmem:[%s1451_s24 + $0x180] sm:$0xff] }
  0x97   : > { %v254_v51 = vld [vmem:[%s1451_s24 + $0x190] sm:$0xff]  ;;  %v257_v52 = vld [vmem:[%s1451_s24 + $0x1a8] sm:$0xff]  ;;  %v259_v53 = vld [vmem:[%s1451_s24 + $0x1b8] sm:$0xff] }
  0x98   : > { %945 = vmatpush1.bf16.msra.mxu1 %v944_v56  ;;  %v256_v54 = vld [vmem:[%s1451_s24 + $0x1a0] sm:$0xff]  ;;  %v258_v55 = vld [vmem:[%s1451_s24 + $0x1b0] sm:$0xff]  ;;  %v261_v56 = vld [vmem:[%s1451_s24 + $0x1c8] sm:$0xff] }
  0x99   : > { %1009 = vmatpush1.bf16.msra.mxu0 %v1008_v57  ;;  %947 = vmatprep.subr.bf16.mxu1 %v946_v58  ;;  %v263_v57 = vld [vmem:[%s1451_s24 + $0x1d8] sm:$0xff]  ;;  %v260_v58 = vld [vmem:[%s1451_s24 + $0x1c0] sm:$0xff]  ;;  %v262_v59 = vld [vmem:[%s1451_s24 + $0x1d0] sm:$0xff] }
  0x9a   : > { %1011 = vmatprep.subr.bf16.mxu0 %v1010_v61  ;;  %v265_v60 = vld [vmem:[%s1451_s24 + $0x1e8] sm:$0xff]  ;;  %v267_v61 = vld [vmem:[%s1451_s24 + $0x1f8] sm:$0xff]  ;;  %v264_v62 = vld [vmem:[%s1451_s24 + $0x1e0] sm:$0xff] }
  0x9b   : > { %v266_v63 = vld [vmem:[%s1451_s24 + $0x1f0] sm:$0xff] }
  0x9c   : > { %949 = vmatpush1.bf16.msra.mxu1 %v948_v0 }
  0x9d   : > { %1013 = vmatpush1.bf16.msra.mxu0 %v1012_v1 }
  0x9f   : > { %461 = vmatmul.mubr.f32.vlgmr.msra.gmra.mrb[0].mxu1 %v204_v2 }
  0xa0   : > { %622 = vmatmul.mubr.f32.vlgmr.msra.gmra.mrb[0].mxu0 %v206_v3  ;;  %466 = vmatprep.mubr.f32.mxu1 %v209_v4 }
  0xa1   : > { %627 = vmatprep.mubr.f32.mxu0 %v211_v5 }
  0xa3   : > { %467 = vmatmul.mubr.f32.gmra.mrb[2].mxu1 %v208_v6 }
  0xa4   : > { %628 = vmatmul.mubr.f32.gmra.mrb[2].mxu0 %v210_v7  ;;  %472 = vmatprep.mubr.f32.mxu1 %v213_v8 }
  0xa5   : > { %633 = vmatprep.mubr.f32.mxu0 %v215_v9 }
  0xa7   : > { %473 = vmatmul.mubr.f32.gmra.mrb[4].mxu1 %v212_v10 }
  0xa8   : > { %634 = vmatmul.mubr.f32.gmra.mrb[4].mxu0 %v214_v11  ;;  %478 = vmatprep.mubr.f32.mxu1 %v217_v12 }
  0xa9   : > { %639 = vmatprep.mubr.f32.mxu0 %v219_v13 }
  0xab   : > { %479 = vmatmul.mubr.f32.gmra.mrb[6].mxu1 %v216_v14 }
  0xac   : > { %640 = vmatmul.mubr.f32.gmra.mrb[6].mxu0 %v218_v15  ;;  %484 = vmatprep.mubr.f32.mxu1 %v221_v16 }
  0xad   : > { %645 = vmatprep.mubr.f32.mxu0 %v223_v17 }
  0xaf   : > { %485 = vmatmul.mubr.f32.gmra.mrb[8].mxu1 %v220_v18 }
  0xb0   : > { %646 = vmatmul.mubr.f32.gmra.mrb[8].mxu0 %v222_v19  ;;  %490 = vmatprep.mubr.f32.mxu1 %v225_v20 }
  0xb1   : > { %651 = vmatprep.mubr.f32.mxu0 %v227_v21 }
  0xb3   : > { %491 = vmatmul.mubr.f32.gmra.mrb[10].mxu1 %v224_v22 }
  0xb4   : > { %652 = vmatmul.mubr.f32.gmra.mrb[10].mxu0 %v226_v23  ;;  %496 = vmatprep.mubr.f32.mxu1 %v229_v24 }
  0xb5   : > { %657 = vmatprep.mubr.f32.mxu0 %v231_v25 }
  0xb7   : > { %497 = vmatmul.mubr.f32.gmra.mrb[12].mxu1 %v228_v26 }
  0xb8   : > { %658 = vmatmul.mubr.f32.gmra.mrb[12].mxu0 %v230_v27  ;;  %502 = vmatprep.mubr.f32.mxu1 %v233_v28 }
  0xb9   : > { %663 = vmatprep.mubr.f32.mxu0 %v235_v29 }
  0xbb   : > { %503 = vmatmul.mubr.f32.gmra.mrb[14].mxu1 %v232_v30 }
  0xbc   : > { %664 = vmatmul.mubr.f32.gmra.mrb[14].mxu0 %v234_v31  ;;  %508 = vmatprep.mubr.f32.mxu1 %v237_v32 }
  0xbd   : > { %669 = vmatprep.mubr.f32.mxu0 %v239_v33 }
  0xbf   : > { %509 = vmatmul.mubr.f32.gmra.mrb[16].mxu1 %v236_v34 }
  0xc0   : > { %670 = vmatmul.mubr.f32.gmra.mrb[16].mxu0 %v238_v35  ;;  %514 = vmatprep.mubr.f32.mxu1 %v241_v36 }
  0xc1   : > { %675 = vmatprep.mubr.f32.mxu0 %v243_v37 }
  0xc3   : > { %515 = vmatmul.mubr.f32.gmra.mrb[18].mxu1 %v240_v38 }
  0xc4   : > { %676 = vmatmul.mubr.f32.gmra.mrb[18].mxu0 %v242_v39  ;;  %520 = vmatprep.mubr.f32.mxu1 %v245_v40 }
  0xc5   : > { %681 = vmatprep.mubr.f32.mxu0 %v247_v41 }
  0xc7   : > { %521 = vmatmul.mubr.f32.gmra.mrb[20].mxu1 %v244_v42 }
  0xc8   : > { %682 = vmatmul.mubr.f32.gmra.mrb[20].mxu0 %v246_v43  ;;  %526 = vmatprep.mubr.f32.mxu1 %v249_v44 }
  0xc9   : > { %687 = vmatprep.mubr.f32.mxu0 %v251_v45 }
  0xcb   : > { %527 = vmatmul.mubr.f32.gmra.mrb[22].mxu1 %v248_v46 }
  0xcc   : > { %688 = vmatmul.mubr.f32.gmra.mrb[22].mxu0 %v250_v47  ;;  %532 = vmatprep.mubr.f32.mxu1 %v253_v48 }
  0xcd   : > { %693 = vmatprep.mubr.f32.mxu0 %v255_v49 }
  0xcf   : > { %533 = vmatmul.mubr.f32.gmra.mrb[24].mxu1 %v252_v50 }
  0xd0   : > { %694 = vmatmul.mubr.f32.gmra.mrb[24].mxu0 %v254_v51  ;;  %538 = vmatprep.mubr.f32.mxu1 %v257_v52 }
  0xd1   : > { %699 = vmatprep.mubr.f32.mxu0 %v259_v53 }
  0xd3   : > { %539 = vmatmul.mubr.f32.gmra.mrb[26].mxu1 %v256_v54 }
  0xd4   : > { %700 = vmatmul.mubr.f32.gmra.mrb[26].mxu0 %v258_v55  ;;  %544 = vmatprep.mubr.f32.mxu1 %v261_v56 }
  0xd5   : > { %705 = vmatprep.mubr.f32.mxu0 %v263_v57 }
  0xd7   : > { %545 = vmatmul.mubr.f32.gmra.mrb[28].mxu1 %v260_v58 }
  0xd8   : > { %706 = vmatmul.mubr.f32.gmra.mrb[28].mxu0 %v262_v59  ;;  %550 = vmatprep.mubr.f32.mxu1 %v265_v60 }
  0xd9   : > { %711 = vmatprep.mubr.f32.mxu0 %v267_v61 }
  0xdb   : > { %551 = vmatmul.mubr.f32.gmra.mrb[30].mxu1 %v264_v62 }
  0xdc   : > { %712 = vmatmul.mubr.f32.gmra.mrb[30].mxu0 %v266_v63 }
 0x172   : > { %v462_v0 = vpop.f32.mrb[0].mxu1 }
 0x173   : > { %v623_v1 = vpop.f32.mrb[0].mxu0  ;;  %v464_v2 = vpop.f32.mrb[1].mxu1 }
 0x174   : > { %v624_v3 = vadd.f32 %v623_v1, %v462_v0  ;;  %v625_v4 = vpop.f32.mrb[1].mxu0 }
 0x175   : > { %v626_v5 = vadd.f32 %v625_v4, %v464_v2 }
 0x176   : > { %718 = vst [vmem:[%s1526_s19] sm:$0xff] %v624_v3  ;;  %v468_v6 = vpop.f32.mrb[2].mxu1 }
 0x177   : > { %719 = vst [vmem:[%s1526_s19 + $0x8] sm:$0xff] %v626_v5  ;;  %v629_v7 = vpop.f32.mrb[2].mxu0  ;;  %v470_v8 = vpop.f32.mrb[3].mxu1 }
 0x178   : > { %v630_v9 = vadd.f32 %v629_v7, %v468_v6  ;;  %v631_v10 = vpop.f32.mrb[3].mxu0 }
 0x179   : > { %v632_v11 = vadd.f32 %v631_v10, %v470_v8 }
 0x17a   : > { %720 = vst [vmem:[%s1526_s19 + $0x10] sm:$0xff] %v630_v9  ;;  %v474_v12 = vpop.f32.mrb[4].mxu1 }
 0x17b   : > { %721 = vst [vmem:[%s1526_s19 + $0x18] sm:$0xff] %v632_v11  ;;  %v635_v13 = vpop.f32.mrb[4].mxu0  ;;  %v476_v14 = vpop.f32.mrb[5].mxu1 }
 0x17c   : > { %v636_v15 = vadd.f32 %v635_v13, %v474_v12  ;;  %v637_v16 = vpop.f32.mrb[5].mxu0 }
 0x17d   : > { %v638_v17 = vadd.f32 %v637_v16, %v476_v14 }
 0x17e   : > { %722 = vst [vmem:[%s1526_s19 + $0x20] sm:$0xff] %v636_v15  ;;  %v480_v18 = vpop.f32.mrb[6].mxu1 }
 0x17f   : > { %723 = vst [vmem:[%s1526_s19 + $0x28] sm:$0xff] %v638_v17  ;;  %v641_v19 = vpop.f32.mrb[6].mxu0  ;;  %v482_v20 = vpop.f32.mrb[7].mxu1 }
 0x180   : > { %v642_v21 = vadd.f32 %v641_v19, %v480_v18  ;;  %v643_v22 = vpop.f32.mrb[7].mxu0 }
 0x181   : > { %v644_v23 = vadd.f32 %v643_v22, %v482_v20 }
 0x182   : > { %724 = vst [vmem:[%s1526_s19 + $0x30] sm:$0xff] %v642_v21  ;;  %v486_v24 = vpop.f32.mrb[8].mxu1 }
 0x183   : > { %725 = vst [vmem:[%s1526_s19 + $0x38] sm:$0xff] %v644_v23  ;;  %v647_v25 = vpop.f32.mrb[8].mxu0  ;;  %v488_v26 = vpop.f32.mrb[9].mxu1 }
 0x184   : > { %v648_v27 = vadd.f32 %v647_v25, %v486_v24  ;;  %v649_v28 = vpop.f32.mrb[9].mxu0 }
 0x185   : > { %v650_v29 = vadd.f32 %v649_v28, %v488_v26 }
 0x186   : > { %726 = vst [vmem:[%s1526_s19 + $0x40] sm:$0xff] %v648_v27  ;;  %v492_v30 = vpop.f32.mrb[10].mxu1 }
 0x187   : > { %727 = vst [vmem:[%s1526_s19 + $0x48] sm:$0xff] %v650_v29  ;;  %v653_v31 = vpop.f32.mrb[10].mxu0  ;;  %v494_v32 = vpop.f32.mrb[11].mxu1 }
 0x188   : > { %v654_v33 = vadd.f32 %v653_v31, %v492_v30  ;;  %v655_v34 = vpop.f32.mrb[11].mxu0 }
 0x189   : > { %v656_v35 = vadd.f32 %v655_v34, %v494_v32 }
 0x18a   : > { %728 = vst [vmem:[%s1526_s19 + $0x50] sm:$0xff] %v654_v33  ;;  %v498_v36 = vpop.f32.mrb[12].mxu1 }
 0x18b   : > { %729 = vst [vmem:[%s1526_s19 + $0x58] sm:$0xff] %v656_v35  ;;  %v659_v37 = vpop.f32.mrb[12].mxu0  ;;  %v500_v38 = vpop.f32.mrb[13].mxu1 }
 0x18c   : > { %v660_v39 = vadd.f32 %v659_v37, %v498_v36  ;;  %v661_v40 = vpop.f32.mrb[13].mxu0 }
 0x18d   : > { %v662_v41 = vadd.f32 %v661_v40, %v500_v38 }
 0x18e   : > { %730 = vst [vmem:[%s1526_s19 + $0x60] sm:$0xff] %v660_v39  ;;  %v504_v42 = vpop.f32.mrb[14].mxu1 }
 0x18f   : > { %731 = vst [vmem:[%s1526_s19 + $0x68] sm:$0xff] %v662_v41  ;;  %v665_v43 = vpop.f32.mrb[14].mxu0  ;;  %v506_v44 = vpop.f32.mrb[15].mxu1 }
 0x190   : > { %v666_v45 = vadd.f32 %v665_v43, %v504_v42  ;;  %v667_v46 = vpop.f32.mrb[15].mxu0 }
 0x191   : > { %v668_v47 = vadd.f32 %v667_v46, %v506_v44 }
 0x192   : > { %732 = vst [vmem:[%s1526_s19 + $0x70] sm:$0xff] %v666_v45  ;;  %v510_v48 = vpop.f32.mrb[16].mxu1 }
 0x193   : > { %733 = vst [vmem:[%s1526_s19 + $0x78] sm:$0xff] %v668_v47  ;;  %v671_v49 = vpop.f32.mrb[16].mxu0  ;;  %v512_v50 = vpop.f32.mrb[17].mxu1 }
 0x194   : > { %v672_v51 = vadd.f32 %v671_v49, %v510_v48  ;;  %v673_v52 = vpop.f32.mrb[17].mxu0 }
 0x195   : > { %v674_v53 = vadd.f32 %v673_v52, %v512_v50 }
 0x196   : > { %734 = vst [vmem:[%s1526_s19 + $0x80] sm:$0xff] %v672_v51  ;;  %v516_v54 = vpop.f32.mrb[18].mxu1 }
 0x197   : > { %735 = vst [vmem:[%s1526_s19 + $0x88] sm:$0xff] %v674_v53  ;;  %v677_v55 = vpop.f32.mrb[18].mxu0  ;;  %v518_v56 = vpop.f32.mrb[19].mxu1 }
 0x198   : > { %v678_v57 = vadd.f32 %v677_v55, %v516_v54  ;;  %v679_v58 = vpop.f32.mrb[19].mxu0 }
 0x199   : > { %v680_v59 = vadd.f32 %v679_v58, %v518_v56 }
 0x19a   : > { %736 = vst [vmem:[%s1526_s19 + $0x90] sm:$0xff] %v678_v57  ;;  %v522_v60 = vpop.f32.mrb[20].mxu1 }
 0x19b   : > { %737 = vst [vmem:[%s1526_s19 + $0x98] sm:$0xff] %v680_v59  ;;  %v683_v61 = vpop.f32.mrb[20].mxu0  ;;  %v524_v62 = vpop.f32.mrb[21].mxu1 }
 0x19c   : > { %v684_v63 = vadd.f32 %v683_v61, %v522_v60  ;;  %v685_v0 = vpop.f32.mrb[21].mxu0 }
 0x19d   : > { %v686_v1 = vadd.f32 %v685_v0, %v524_v62 }
 0x19e   : > { %738 = vst [vmem:[%s1526_s19 + $0xa0] sm:$0xff] %v684_v63  ;;  %v528_v2 = vpop.f32.mrb[22].mxu1 }
 0x19f   : > { %739 = vst [vmem:[%s1526_s19 + $0xa8] sm:$0xff] %v686_v1  ;;  %v689_v3 = vpop.f32.mrb[22].mxu0  ;;  %v530_v4 = vpop.f32.mrb[23].mxu1 }
 0x1a0   : > { %v690_v5 = vadd.f32 %v689_v3, %v528_v2  ;;  %v691_v6 = vpop.f32.mrb[23].mxu0 }
 0x1a1   : > { %v692_v7 = vadd.f32 %v691_v6, %v530_v4 }
 0x1a2   : > { %740 = vst [vmem:[%s1526_s19 + $0xb0] sm:$0xff] %v690_v5  ;;  %v534_v8 = vpop.f32.mrb[24].mxu1 }
 0x1a3   : > { %741 = vst [vmem:[%s1526_s19 + $0xb8] sm:$0xff] %v692_v7  ;;  %v695_v9 = vpop.f32.mrb[24].mxu0  ;;  %v536_v10 = vpop.f32.mrb[25].mxu1 }
 0x1a4   : > { %v696_v11 = vadd.f32 %v695_v9, %v534_v8  ;;  %v697_v12 = vpop.f32.mrb[25].mxu0 }
 0x1a5   : > { %v698_v13 = vadd.f32 %v697_v12, %v536_v10 }
 0x1a6   : > { %742 = vst [vmem:[%s1526_s19 + $0xc0] sm:$0xff] %v696_v11  ;;  %v540_v14 = vpop.f32.mrb[26].mxu1 }
 0x1a7   : > { %743 = vst [vmem:[%s1526_s19 + $0xc8] sm:$0xff] %v698_v13  ;;  %v701_v15 = vpop.f32.mrb[26].mxu0  ;;  %v542_v16 = vpop.f32.mrb[27].mxu1 }
 0x1a8   : > { %v702_v17 = vadd.f32 %v701_v15, %v540_v14  ;;  %v703_v18 = vpop.f32.mrb[27].mxu0 }
 0x1a9   : > { %v704_v19 = vadd.f32 %v703_v18, %v542_v16 }
 0x1aa   : > { %744 = vst [vmem:[%s1526_s19 + $0xd0] sm:$0xff] %v702_v17  ;;  %v546_v20 = vpop.f32.mrb[28].mxu1 }
 0x1ab   : > { %745 = vst [vmem:[%s1526_s19 + $0xd8] sm:$0xff] %v704_v19  ;;  %v707_v21 = vpop.f32.mrb[28].mxu0  ;;  %v548_v22 = vpop.f32.mrb[29].mxu1 }
 0x1ac   : > { %v708_v23 = vadd.f32 %v707_v21, %v546_v20  ;;  %v709_v24 = vpop.f32.mrb[29].mxu0 }
 0x1ad   : > { %v710_v25 = vadd.f32 %v709_v24, %v548_v22 }
 0x1ae   : > { %746 = vst [vmem:[%s1526_s19 + $0xe0] sm:$0xff] %v708_v23  ;;  %v552_v26 = vpop.f32.mrb[30].mxu1 }
 0x1af   : > { %747 = vst [vmem:[%s1526_s19 + $0xe8] sm:$0xff] %v710_v25  ;;  %v713_v27 = vpop.f32.mrb[30].mxu0  ;;  %v554_v28 = vpop.f32.mrb[31].mxu1 }
 0x1b0   : > { %v714_v29 = vadd.f32 %v713_v27, %v552_v26  ;;  %v715_v30 = vpop.f32.mrb[31].mxu0 }
 0x1b1   : > { %v716_v31 = vadd.f32 %v715_v30, %v554_v28 }
 0x1b2   : > { %748 = vst [vmem:[%s1526_s19 + $0xf0] sm:$0xff] %v714_v29 }
 0x1b3   : > { %749 = vst [vmem:[%s1526_s19 + $0xf8] sm:$0xff] %v716_v31 }
 0x1b4   : > { %1196 = shalt.err (!%p1193_p5)
}
 0x1b5   : > { %s1197_s3 = scalar_lea.hbm %s1563_s7, 4096  ;;  %s1201_s16 = scalar_lea.hbm %s1618_s2, 8192 }
 0x1b6   : > { %p1198_p9 = scmp.ne.s32.totalorder %s1563_s7, %s1197_s3  ;;  %p1202_p3 = scmp.lt.u32.totalorder %s1563_s7, %s1618_s2 }
 0x1b7   : > { %p1203_p7 = scmp.lt.u32.totalorder %s1201_s16, %s1197_s3  ;;  %p1205_p4 = scmp.lt.u32.totalorder %s1197_s3, %s1563_s7 }
 0x1b8   : > { %p1199_p1 = pnand %p1198_p9, %p1391_p10 }
 0x1b9   : > { %p1204_p13 = por %p1203_p7, %p1202_p3 }
 0x1ba   : > { %p1200_p2 = pneg %p1199_p1 }
 0x1bb   : > { %p1206_p6 = por %p1205_p4, %p1204_p13 }
 0x1bd   : > { %p1207_p8 = pnand %p1206_p6, %p1200_p2 }
 0x1bf   : > { %1210 = shalt.err (!%p1207_p8)
}
 0x1c0   : > { %s1278_s17 = smov 256   ;;  %s1279_s19 = smov 16  }
 0x1c1   : > { %1052 = dma.vmem_to_hbm [thread:$0]  (%p1391_p10), %s1565_s4, 4096, %s1563_s7, %s751_s12, %s1278_s17, %s1278_s17, %s1279_s19  }
 0x1c2 PF: > { %s782_s21 = sand.u32 1, %s1249_s9   ;;  %p1636_p12 = scmp.ne.s32.totalorder %s1626_s20, 0 }
 0x1c3   : > { %p1637_p11 = scmp.ge.s32.totalorder %s1269_s14, 2  ;;  %s783_s5 = scalar_lea.sflag [#allocation4], %s782_s21 }
 0x1c5   : > { %p1063_p0 = pnand %p1637_p11, %p1636_p12 }
 0x1c7   : > { %1244 = dma.done.wait (!%p1063_p0), %s783_s5, 4096  }
 0x1c8   : > { %1246 = vsyncadd (!%p1063_p0), %s783_s5, 4294963200  ;;  %s19_s14 = sadd.s32 1, %s1269_s14   ;;  %s1638_s9 = smov %s1253_s10 }
 0x1c9   : > { %p16_p5 = scmp.ge.s32.totalorder %s19_s14, 4   ;;  %s1639_s10 = smov %s1257_s11 }
 0x1ca   : > { %s1640_s11 = smov %s1400_s28  ;;  %s1641_s12 = smov %s1265_s13 }
 0x1cb   : > { %s1642_s13 = smov %s1644_s25  ;;  %18 = sbr.rel (!%p16_p5) target bundleno = 7 (0x7), region = 78 }
 0x1d2   :  { %788 = vsyncpa [#allocation3], 1 }
 0x1d3   :  { %790 = vsyncpa [#allocation3 + $0x1], 1 }
 0x1d4   :  { %791 = vsyncpa [#allocation6], 1 }
 0x1d5   :  { %792 = vsyncpa [#allocation4], 1 }
 0x1d6   :  { %794 = vsyncpa [#allocation4 + $0x1], 1 }

</bundles_post_ra>
